<compile_context>
chip_gen: v6e
topology: v6e:2x2x1
jax: 0.10.0
libtpu: 0.0.40
codegen_flags: <defaults>
</compile_context>

<pallas_src>
import functools

import jax
import jax.numpy as jnp
from jax import lax
from jax.experimental import pallas as pl
from jax.experimental.pallas import tpu as pltpu

# ----- model hyper-parameters (small, consistent with the module) -----------
NTOKEN = 16          # vocabulary size
NINP   = 32          # embedding size
NHID   = 32          # encoder hidden size
NOUT   = 3           # number of output classes
SEQ    = 8           # sequence length
BATCH  = 4           # batch size (must be even: clause_1 / clause_2 split)
PADDING_IDX = NTOKEN - 1
LANES = 128

# ----- packed weight-slab row offsets (all multiples of 8) ------------------
EMB_OFF   = 0                      # emb_w  (NTOKEN, NINP)
ENCW_OFF  = EMB_OFF + NTOKEN       # enc_w  (NINP, NHID)
ENCB_OFF  = ENCW_OFF + NINP        # enc_b  (1, NHID)
W1A_OFF   = ENCB_OFF + 8           # w1[0:NHID]        (c1 block)
W1B_OFF   = W1A_OFF + NHID         # w1[NHID:2*NHID]   (c2 block)
W1C_OFF   = W1B_OFF + NHID         # w1[2*NHID:3*NHID] (c1*c2 block)
W1D_OFF   = W1C_OFF + NHID         # w1[3*NHID:4*NHID] (|c1-c2| block)
B1_OFF    = W1D_OFF + NHID         # b1 (1, NHID)
W2_OFF    = B1_OFF + 8             # w2 (NHID, 128)  (zero-padded cols)
B2_OFF    = W2_OFF + NHID          # b2 (1, 128)     (zero-padded cols)
SLAB_ROWS = B2_OFF + 8             # = 232


def classifier_kernel(tokens_ref, slab_ref, out_ref, *, seq, batch):
    """tokens_ref: (1, seq*batch, 1) int32 (seq-major flat order s*batch+b).
    slab_ref:   (SLAB_ROWS, 128) f32 packed weights.
    out_ref:    (1, batch//2, 128) f32 logits (cols >= NOUT are zero)."""
    sb = seq * batch
    half = batch // 2

    tok = tokens_ref[0]                                          # (S*B, 1) int32

    # ---- masked one-hot (2-D) ----------------------------------------------
    tok_iota = lax.broadcasted_iota(jnp.int32, (sb, NTOKEN), 1)
    oh = ((tok == tok_iota) & (tok != PADDING_IDX)).astype(jnp.float32)  # (S*B, T)

    # ---- per-batch token counts: C[b, t] = sum_s onehot * mask --------------
    # flat index k = s*batch + b  =>  select rows with k % batch == b
    col = lax.broadcasted_iota(jnp.int32, (batch, sb), 1)
    row = lax.broadcasted_iota(jnp.int32, (batch, sb), 0)
    msel = (col % batch == row).astype(jnp.float32)              # (B, S*B)
    counts = jnp.dot(msel, oh, preferred_element_type=jnp.float32)   # (B, T)
    denom = jnp.sum(counts, axis=1, keepdims=True)               # (B, 1) non-pad count

    # ---- fused embedding + masked mean-pool ---------------------------------
    emb_w = slab_ref[EMB_OFF:EMB_OFF + NTOKEN, 0:NINP]           # (T, ninp)
    pooled_sum = jnp.dot(counts, emb_w,
                         preferred_element_type=jnp.float32)     # (B, ninp)
    pooled = pooled_sum * pl.reciprocal(jnp.maximum(denom, 1.0), approx=True)
    # nn.Dropout(dropouti) -> identity at inference.

    # ---- encoder ------------------------------------------------------------
    # TODO(synk): ordered_memory.OrderedMemory (stick-breaking recurrent memory)
    # source is not provided with the module; stand-in = masked mean-pool over
    # the sequence + Linear + tanh, producing the same (batch, nhid) interface.
    enc_w = slab_ref[ENCW_OFF:ENCW_OFF + NINP, 0:NHID]
    enc_b = slab_ref[ENCB_OFF:ENCB_OFF + 1, 0:NHID]
    enc = jnp.tanh(jnp.dot(pooled, enc_w,
                           preferred_element_type=jnp.float32) + enc_b)   # (B, nhid)

    # ---- clause split + split-weight feature matmul (no lane concat) --------
    c1 = enc[:half]                                              # (B/2, nhid)
    c2 = enc[half:]                                              # (B/2, nhid)
    w1a = slab_ref[W1A_OFF:W1A_OFF + NHID, 0:NHID]
    w1b = slab_ref[W1B_OFF:W1B_OFF + NHID, 0:NHID]
    w1c = slab_ref[W1C_OFF:W1C_OFF + NHID, 0:NHID]
    w1d = slab_ref[W1D_OFF:W1D_OFF + NHID, 0:NHID]
    b1  = slab_ref[B1_OFF:B1_OFF + 1, 0:NHID]
    h = (jnp.dot(c1, w1a, preferred_element_type=jnp.float32)
         + jnp.dot(c2, w1b, preferred_element_type=jnp.float32)
         + jnp.dot(c1 * c2, w1c, preferred_element_type=jnp.float32)
         + jnp.dot(jnp.abs(c1 - c2), w1d, preferred_element_type=jnp.float32)
         + b1)                                                   # (B/2, nhid)
    h = jnp.where(h > 0, h, jnp.exp(jnp.minimum(h, 0.0)) - 1.0)  # ELU(alpha=1)

    # ---- final Linear (lane-dense 128-wide output, cols >= NOUT are zero) ----
    w2 = slab_ref[W2_OFF:W2_OFF + NHID, :]                       # (nhid, 128)
    b2 = slab_ref[B2_OFF:B2_OFF + 1, :]                          # (1, 128)
    out = jnp.dot(h, w2, preferred_element_type=jnp.float32) + b2
    out_ref[0] = out.astype(out_ref.dtype)


def pack_params(params):
    """Pack every weight/bias into one (SLAB_ROWS, 128) f32 slab."""
    def seg(x, rows):
        x = jnp.asarray(x, jnp.float32)
        r, c = x.shape
        return jnp.pad(x, ((0, rows - r), (0, LANES - c)))

    w1 = params["w1"]                                            # (4*nhid, nhid)
    pieces = [
        seg(params["emb_w"], NTOKEN),
        seg(params["enc_w"], NINP),
        seg(params["enc_b"], 8),
        seg(w1[0 * NHID:1 * NHID], NHID),
        seg(w1[1 * NHID:2 * NHID], NHID),
        seg(w1[2 * NHID:3 * NHID], NHID),
        seg(w1[3 * NHID:4 * NHID], NHID),
        seg(params["b1"], 8),
        seg(params["w2"], NHID),
        seg(params["b2"], 8),
    ]
    slab = jnp.concatenate(pieces, axis=0)
    assert slab.shape == (SLAB_ROWS, LANES)
    return slab


def classifier_forward(tokens, params):
    """tokens: (seq, batch) or (groups, seq, batch) int32.
    Returns logits (batch//2, NOUT) or (groups, batch//2, NOUT) float32."""
    squeeze = tokens.ndim == 2
    if squeeze:
        tokens = tokens[None]
    g, s, b = tokens.shape
    half = b // 2
    slab = pack_params(params)
    tokens_flat = tokens.reshape(g, s * b, 1)      # flatten host-side (no 3-D in kernel)

    out = pl.pallas_call(
        functools.partial(classifier_kernel, seq=s, batch=b),
        out_shape=jax.ShapeDtypeStruct((g, half, LANES), jnp.float32),
        grid_spec=pltpu.PrefetchScalarGridSpec(
            num_scalar_prefetch=0,
            grid=(g,),
            in_specs=[
                pl.BlockSpec((1, s * b, 1), lambda i: (i, 0, 0)),
                pl.BlockSpec((SLAB_ROWS, LANES), lambda i: (0, 0)),  # resident weights
            ],
            out_specs=pl.BlockSpec((1, half, LANES), lambda i: (i, 0, 0)),
        ),
        compiler_params=pltpu.CompilerParams(
            dimension_semantics=("parallel",)),
    )(tokens_flat, slab)

    logits = out[:, :, :NOUT]
    return logits[0] if squeeze else logits


def init_params(key):
    """Deterministic synthetic init mirroring the module's parameter shapes."""
    k_emb, k_enc, k_1, k_2 = jax.random.split(key, 4)
    initrange = 0.1
    # Classifier.init_weights(): embedding ~ U(-0.1, 0.1) over ALL rows
    emb_w = jax.random.uniform(k_emb, (NTOKEN, NINP), jnp.float32,
                               -initrange, initrange)

    def linear(k, fan_in, fan_out):
        bound = float(fan_in) ** -0.5        # PyTorch nn.Linear default init bound
        kw, kb = jax.random.split(k)
        w = jax.random.uniform(kw, (fan_in, fan_out), jnp.float32, -bound, bound)
        b = jax.random.uniform(kb, (1, fan_out), jnp.float32, -bound, bound)
        return w, b

    enc_w, enc_b = linear(k_enc, NINP, NHID)         # encoder stand-in projection
    w1, b1 = linear(k_1, 4 * NHID, NHID)             # mlp[1]: Linear(4*nhid, nhid)
    w2, b2 = linear(k_2, NHID, NOUT)                 # mlp[4]: Linear(nhid, nout)
    return dict(emb_w=emb_w, enc_w=enc_w, enc_b=enc_b,
                w1=w1, b1=b1, w2=w2, b2=b2)


def reference_forward(tokens, params):
    """Pure-JAX reference of the same (stand-in-encoder) forward pass."""
    mask = (tokens != PADDING_IDX).astype(jnp.float32)            # (S, B)
    emb = params["emb_w"][tokens]                                 # (S, B, ninp)
    pooled = (emb * mask[..., None]).sum(0)
    pooled = pooled / jnp.maximum(mask.sum(0), 1.0)[:, None]
    enc = jnp.tanh(pooled @ params["enc_w"] + params["enc_b"])
    half = tokens.shape[1] // 2
    c1, c2 = enc[:half], enc[half:]
    feats = jnp.concatenate([c1, c2, c1 * c2, jnp.abs(c1 - c2)], axis=1)
    h = feats @ params["w1"] + params["b1"]
    h = jnp.where(h > 0, h, jnp.exp(jnp.minimum(h, 0.0)) - 1.0)
    return h @ params["w2"] + params["b2"]


if __name__ == "__main__":
    key = jax.random.PRNGKey(0)
    k_params, k_tokens = jax.random.split(key)
    params = init_params(k_params)
    # Token ids in [0, NTOKEN); may include PADDING_IDX, exercising the mask.
    tokens = jax.random.randint(k_tokens, (SEQ, BATCH), 0, NTOKEN, dtype=jnp.int32)

    logits = classifier_forward(tokens, params)
    jax.block_until_ready(logits)
    assert logits.shape == (BATCH // 2, NOUT)

    # numerical check against the pure-JAX reference (approx reciprocal => loose tol)
    ref = reference_forward(tokens, params)
    max_err = float(jnp.max(jnp.abs(logits - ref)))
    assert max_err < 1e-2, f"max abs error {max_err}"

    # batched path: grid over independent token batches, weights stay resident
    G = 4
    tokens_batched = jax.random.randint(jax.random.PRNGKey(1),
                                        (G, SEQ, BATCH), 0, NTOKEN, dtype=jnp.int32)
    logits_b = classifier_forward(tokens_batched, params)
    jax.block_until_ready(logits_b)
    assert logits_b.shape == (G, BATCH // 2, NOUT)

    print("KERNEL_OK")
</pallas_src>

<mosaic_0001>
module attributes {stable_mosaic.version = 11 : i64} {
  func.func @classifier_kernel(%arg0: i32, %arg1: memref<1x32x1xi32, #tpu.memory_space<vmem>>, %arg2: memref<232x128xf32, #tpu.memory_space<vmem>>, %arg3: memref<1x2x128xf32, #tpu.memory_space<vmem>>) attributes {dimension_semantics = [#tpu.dimension_semantics<parallel>], iteration_bounds = array<i64: 1>, scalar_prefetch = 0 : i64, scratch_operands = 0 : i64, tpu.core_type = #tpu.core_type<tc>, window_params = [{transform_indices = @transform_0, window_bounds = array<i64: 1, 32, 1>}, {pipeline_mode = #tpu.pipeline_mode<synchronous>, transform_indices = @transform_1, window_bounds = array<i64: 232, 128>}, {transform_indices = @transform_2, window_bounds = array<i64: 1, 2, 128>}]} {
    %c0 = arith.constant 0 : index
    %c0_0 = arith.constant 0 : index
    %c0_1 = arith.constant 0 : index
    %0 = vector.load %arg1[%c0, %c0_0, %c0_1] : memref<1x32x1xi32, #tpu.memory_space<vmem>>, vector<1x32x1xi32>
    %1 = vector.shape_cast %0 : vector<1x32x1xi32> to vector<32x1xi32>
    %2 = tpu.iota {dimensions = array<i32: 1>} : vector<32x16xi32>
    %3 = vector.broadcast %1 : vector<32x1xi32> to vector<32x16xi32>
    %4 = arith.cmpi eq, %3, %2 : vector<32x16xi32>
    %c15_i32 = arith.constant 15 : i32
    %5 = vector.broadcast %c15_i32 : i32 to vector<32x1xi32>
    %6 = arith.cmpi ne, %1, %5 : vector<32x1xi32>
    %7 = vector.broadcast %6 : vector<32x1xi1> to vector<32x16xi1>
    %8 = arith.andi %4, %7 : vector<32x16xi1>
    %9 = arith.extui %8 : vector<32x16xi1> to vector<32x16xi32>
    %10 = arith.sitofp %9 : vector<32x16xi32> to vector<32x16xf32>
    %11 = tpu.iota {dimensions = array<i32: 1>} : vector<4x32xi32>
    %12 = tpu.iota {dimensions = array<i32: 0>} : vector<4x32xi32>
    %c4_i32 = arith.constant 4 : i32
    %c0_i32 = arith.constant 0 : i32
    %13 = arith.cmpi eq, %c4_i32, %c0_i32 : i32
    %c1_i32 = arith.constant 1 : i32
    %14 = arith.select %13, %c1_i32, %c4_i32 : i32
    %15 = vector.broadcast %14 : i32 to vector<4x32xi32>
    %16 = arith.remsi %11, %15 : vector<4x32xi32>
    %c0_i32_2 = arith.constant 0 : i32
    %17 = vector.broadcast %c0_i32_2 : i32 to vector<4x32xi32>
    %18 = arith.cmpi ne, %16, %17 : vector<4x32xi32>
    %c0_i32_3 = arith.constant 0 : i32
    %19 = vector.broadcast %c0_i32_3 : i32 to vector<4x32xi32>
    %20 = arith.cmpi slt, %16, %19 : vector<4x32xi32>
    %c0_i32_4 = arith.constant 0 : i32
    %21 = arith.cmpi slt, %14, %c0_i32_4 : i32
    %22 = vector.broadcast %21 : i1 to vector<4x32xi1>
    %23 = vector.broadcast %22 : vector<4x32xi1> to vector<4x32xi1>
    %24 = arith.xori %20, %23 : vector<4x32xi1>
    %25 = arith.andi %24, %18 : vector<4x32xi1>
    %26 = vector.broadcast %14 : i32 to vector<4x32xi32>
    %27 = arith.addi %16, %26 : vector<4x32xi32>
    %28 = arith.select %25, %27, %16 : vector<4x32xi1>, vector<4x32xi32>
    %29 = arith.cmpi eq, %28, %12 : vector<4x32xi32>
    %30 = arith.extui %29 : vector<4x32xi1> to vector<4x32xi32>
    %31 = arith.sitofp %30 : vector<4x32xi32> to vector<4x32xf32>
    %cst = arith.constant dense<0.000000e+00> : vector<4x16xf32>
    %32 = tpu.matmul %31, %10, %cst {dimension_numbers = #tpu.dot_dimension_numbers<[1], [0], [0], [1], [0, 0, 1, 1], [], []>} : vector<4x32xf32>, vector<32x16xf32>, vector<4x16xf32> -> vector<4x16xf32>
    %cst_5 = arith.constant dense<0.000000e+00> : vector<4xf32>
    %33 = vector.multi_reduction <add>, %32, %cst_5 [1] : vector<4x16xf32> to vector<4xf32>
    %34 = vector.shape_cast %33 : vector<4xf32> to vector<4x1xf32>
    %c0_6 = arith.constant 0 : index
    %c0_7 = arith.constant 0 : index
    %35 = vector.load %arg2[%c0_6, %c0_7] : memref<232x128xf32, #tpu.memory_space<vmem>>, vector<16x32xf32>
    %cst_8 = arith.constant dense<0.000000e+00> : vector<4x32xf32>
    %36 = tpu.matmul %32, %35, %cst_8 {dimension_numbers = #tpu.dot_dimension_numbers<[1], [0], [0], [1], [0, 0, 1, 1], [], []>} : vector<4x16xf32>, vector<16x32xf32>, vector<4x32xf32> -> vector<4x32xf32>
    %cst_9 = arith.constant 1.000000e+00 : f32
    %37 = vector.broadcast %cst_9 : f32 to vector<4x1xf32>
    %38 = arith.maximumf %34, %37 : vector<4x1xf32>
    %39 = tpu.reciprocal %38 {approx = true} : vector<4x1xf32> -> vector<4x1xf32>
    %40 = vector.broadcast %39 : vector<4x1xf32> to vector<4x32xf32>
    %41 = arith.mulf %36, %40 : vector<4x32xf32>
    %c16 = arith.constant 16 : index
    %c0_10 = arith.constant 0 : index
    %42 = vector.load %arg2[%c16, %c0_10] : memref<232x128xf32, #tpu.memory_space<vmem>>, vector<32x32xf32>
    %c48 = arith.constant 48 : index
    %c0_11 = arith.constant 0 : index
    %43 = vector.load %arg2[%c48, %c0_11] : memref<232x128xf32, #tpu.memory_space<vmem>>, vector<1x32xf32>
    %cst_12 = arith.constant dense<0.000000e+00> : vector<4x32xf32>
    %44 = tpu.matmul %41, %42, %cst_12 {dimension_numbers = #tpu.dot_dimension_numbers<[1], [0], [0], [1], [0, 0, 1, 1], [], []>} : vector<4x32xf32>, vector<32x32xf32>, vector<4x32xf32> -> vector<4x32xf32>
    %45 = vector.broadcast %43 : vector<1x32xf32> to vector<4x32xf32>
    %46 = arith.addf %44, %45 : vector<4x32xf32>
    %47 = math.tanh %46 : vector<4x32xf32>
    %48 = vector.extract_strided_slice %47 {offsets = [0, 0], sizes = [2, 32], strides = [1, 1]} : vector<4x32xf32> to vector<2x32xf32>
    %49 = vector.extract_strided_slice %47 {offsets = [2, 0], sizes = [2, 32], strides = [1, 1]} : vector<4x32xf32> to vector<2x32xf32>
    %c56 = arith.constant 56 : index
    %c0_13 = arith.constant 0 : index
    %50 = vector.load %arg2[%c56, %c0_13] : memref<232x128xf32, #tpu.memory_space<vmem>>, vector<32x32xf32>
    %c88 = arith.constant 88 : index
    %c0_14 = arith.constant 0 : index
    %51 = vector.load %arg2[%c88, %c0_14] : memref<232x128xf32, #tpu.memory_space<vmem>>, vector<32x32xf32>
    %c120 = arith.constant 120 : index
    %c0_15 = arith.constant 0 : index
    %52 = vector.load %arg2[%c120, %c0_15] : memref<232x128xf32, #tpu.memory_space<vmem>>, vector<32x32xf32>
    %c152 = arith.constant 152 : index
    %c0_16 = arith.constant 0 : index
    %53 = vector.load %arg2[%c152, %c0_16] : memref<232x128xf32, #tpu.memory_space<vmem>>, vector<32x32xf32>
    %c184 = arith.constant 184 : index
    %c0_17 = arith.constant 0 : index
    %54 = vector.load %arg2[%c184, %c0_17] : memref<232x128xf32, #tpu.memory_space<vmem>>, vector<1x32xf32>
    %cst_18 = arith.constant dense<0.000000e+00> : vector<2x32xf32>
    %55 = tpu.matmul %48, %50, %cst_18 {dimension_numbers = #tpu.dot_dimension_numbers<[1], [0], [0], [1], [0, 0, 1, 1], [], []>} : vector<2x32xf32>, vector<32x32xf32>, vector<2x32xf32> -> vector<2x32xf32>
    %cst_19 = arith.constant dense<0.000000e+00> : vector<2x32xf32>
    %56 = tpu.matmul %49, %51, %cst_19 {dimension_numbers = #tpu.dot_dimension_numbers<[1], [0], [0], [1], [0, 0, 1, 1], [], []>} : vector<2x32xf32>, vector<32x32xf32>, vector<2x32xf32> -> vector<2x32xf32>
    %57 = arith.addf %55, %56 : vector<2x32xf32>
    %58 = arith.mulf %48, %49 : vector<2x32xf32>
    %cst_20 = arith.constant dense<0.000000e+00> : vector<2x32xf32>
    %59 = tpu.matmul %58, %52, %cst_20 {dimension_numbers = #tpu.dot_dimension_numbers<[1], [0], [0], [1], [0, 0, 1, 1], [], []>} : vector<2x32xf32>, vector<32x32xf32>, vector<2x32xf32> -> vector<2x32xf32>
    %60 = arith.addf %57, %59 : vector<2x32xf32>
    %61 = arith.subf %48, %49 : vector<2x32xf32>
    %62 = math.absf %61 : vector<2x32xf32>
    %cst_21 = arith.constant dense<0.000000e+00> : vector<2x32xf32>
    %63 = tpu.matmul %62, %53, %cst_21 {dimension_numbers = #tpu.dot_dimension_numbers<[1], [0], [0], [1], [0, 0, 1, 1], [], []>} : vector<2x32xf32>, vector<32x32xf32>, vector<2x32xf32> -> vector<2x32xf32>
    %64 = arith.addf %60, %63 : vector<2x32xf32>
    %65 = vector.broadcast %54 : vector<1x32xf32> to vector<2x32xf32>
    %66 = arith.addf %64, %65 : vector<2x32xf32>
    %cst_22 = arith.constant 0.000000e+00 : f32
    %67 = vector.broadcast %cst_22 : f32 to vector<2x32xf32>
    %68 = arith.cmpf ogt, %66, %67 : vector<2x32xf32>
    %cst_23 = arith.constant 0.000000e+00 : f32
    %69 = vector.broadcast %cst_23 : f32 to vector<2x32xf32>
    %70 = arith.minimumf %66, %69 : vector<2x32xf32>
    %71 = math.exp %70 : vector<2x32xf32>
    %cst_24 = arith.constant 1.000000e+00 : f32
    %72 = vector.broadcast %cst_24 : f32 to vector<2x32xf32>
    %73 = arith.subf %71, %72 : vector<2x32xf32>
    %74 = arith.select %68, %66, %73 : vector<2x32xi1>, vector<2x32xf32>
    %c192 = arith.constant 192 : index
    %c0_25 = arith.constant 0 : index
    %75 = vector.load %arg2[%c192, %c0_25] : memref<232x128xf32, #tpu.memory_space<vmem>>, vector<32x128xf32>
    %c224 = arith.constant 224 : index
    %c0_26 = arith.constant 0 : index
    %76 = vector.load %arg2[%c224, %c0_26] : memref<232x128xf32, #tpu.memory_space<vmem>>, vector<1x128xf32>
    %cst_27 = arith.constant dense<0.000000e+00> : vector<2x128xf32>
    %77 = tpu.matmul %74, %75, %cst_27 {dimension_numbers = #tpu.dot_dimension_numbers<[1], [0], [0], [1], [0, 0, 1, 1], [], []>} : vector<2x32xf32>, vector<32x128xf32>, vector<2x128xf32> -> vector<2x128xf32>
    %78 = vector.broadcast %76 : vector<1x128xf32> to vector<2x128xf32>
    %79 = arith.addf %77, %78 : vector<2x128xf32>
    %c0_28 = arith.constant 0 : index
    %c0_29 = arith.constant 0 : index
    %c0_30 = arith.constant 0 : index
    %80 = vector.load %arg3[%c0_28, %c0_29, %c0_30] : memref<1x2x128xf32, #tpu.memory_space<vmem>>, vector<1x2x128xf32>
    %81 = vector.shape_cast %80 : vector<1x2x128xf32> to vector<2x128xf32>
    %82 = vector.shape_cast %79 : vector<2x128xf32> to vector<1x2x128xf32>
    tpu.vector_store %arg3[%c0_28, %c0_29, %c0_30], %82 {strides = array<i32>} : memref<1x2x128xf32, #tpu.memory_space<vmem>>, vector<1x2x128xf32>,
    return
  }
  func.func @transform_0(%arg0: i32) -> (i32, i32, i32) {
    %c0_i32 = arith.constant 0 : i32
    %c0_i32_0 = arith.constant 0 : i32
    %c0_i32_1 = arith.constant 0 : i32
    return %arg0, %c0_i32, %c0_i32_0 : i32, i32, i32
  }
  func.func @transform_1(%arg0: i32) -> (i32, i32) {
    %c0_i32 = arith.constant 0 : i32
    %c0_i32_0 = arith.constant 0 : i32
    %c0_i32_1 = arith.constant 0 : i32
    return %c0_i32, %c0_i32_0 : i32, i32
  }
  func.func @transform_2(%arg0: i32) -> (i32, i32, i32) {
    %c0_i32 = arith.constant 0 : i32
    %c0_i32_0 = arith.constant 0 : i32
    %c0_i32_1 = arith.constant 0 : i32
    return %arg0, %c0_i32, %c0_i32_0 : i32, i32, i32
  }
}

</mosaic_0001>

<bundles_post_ra>
// kernel: tpu_custom_call.1
= control target key start
LH: loop header
LB: loop body
LE: loop exit
PB: predicated region body
PF: predicated region fallthrough
CT: control target
= control target key end

     0   :  { %7 = vsyncpa [#allocation3], 0  ;;  %s1063_s0 = inlined_call_operand.vmem [shape: s32[1,32,1], index: 0, kind: input, shape index: {}]   ;;  %s1064_s1 = inlined_call_operand.hbm [shape: f32[232,128], index: 1, kind: input, shape index: {}]   ;;  %s1065_s2 = inlined_call_operand.hbm [shape: f32[1,2,128], index: 2, kind: output, shape index: {}]  }
   0x1   :  { %8 = vsyncpa [#allocation4], 0  ;;  %s968_s9 = smov [#allocation2]  }
   0x2   :  { %s16_s10 = sshll.u32 %s968_s9, 4  ;;  %s17_s10 = int_to_ptr.vmem [resolvable:$true] %s16_s10 }
   0x3   :  { %s932_s11 = scalar_lea.vmem %s17_s10, 3712  ;;  %p937_p1 = scmp.lt.s32.totalorder %s17_s10, %s17_s10 }
   0x4   :  { %p933_p0 = scmp.ne.s32.totalorder %s17_s10, %s932_s11  ;;  %p938_p2 = scmp.lt.s32.totalorder %s932_s11, %s932_s11 }
   0x6   :  { %p939_p3 = por %p938_p2, %p937_p1 }
   0x8   :  { %p940_p4 = pnand %p939_p3, %p933_p0 }
   0xa   :  { %943 = shalt.err (!%p940_p4)
}
   0xb   :  { %s969_s12 = smov 128   ;;  %s970_s13 = smov 8  }
   0xc   :  { %22 = dma.hbm_to_vmem [thread:$0]  %s1064_s1, 3712, %s17_s10, [#allocation3], %s969_s12, %s969_s12, %s970_s13  }
   0xd   :  { %964 = dma.done.wait [#allocation3], 3712  }
   0xe   :  { %965 = vsyncadd [#allocation3], 4294963584  ;;  %v971_v0 = vmov 0   ;;  %v29_v1 = vld [vmem:[%s1063_s0 + $0x18] sm:$0xff]  ;;  %v28_v2 = vld [vmem:[%s1063_s0 + $0x10] sm:$0xff]  ;;  %v972_v7 = vmov 0.0   ;;  %v30_v11 = vlaneseq }
   0xf   :  { %917 = vset.pattern.permute.xlu1 %v971_v0  ;;  %916 = vset.pattern.permute.xlu0 %v971_v0  ;;  %v27_v3 = vld [vmem:[%s1063_s0 + $0x8] sm:$0xff]  ;;  %vm51_vm0 = vcmp.ne.s32.totalorder %v29_v1, 15  ;;  %vm50_vm1 = vcmp.ne.s32.totalorder %v28_v2, 15  ;;  %v26_v6 = vld [vmem:[%s1063_s0] sm:$0xff]  ;;  %vm973_vm4 = vmmov 0   ;;  %v974_v19 = vmov 1.0  }
  0x10   :  { %42 = vperm.xlu0 %916, %v29_v1   ;;  %39 = vperm.xlu1 %917, %v28_v2   ;;  %v55_v4 = vsel %vm51_vm0, 1, %v971_v0  ;;  %v54_v5 = vsel %vm50_vm1, 1, %v971_v0  ;;  %vm49_vm2 = vcmp.ne.s32.totalorder %v27_v3, 15  ;;  %vm48_vm3 = vcmp.ne.s32.totalorder %v26_v6, 15  ;;  %v180_v10 = vld [vmem:[#allocation2 + $0x8] sm:$0xff]  ;;  %v179_v25 = vld [vmem:[#allocation2] sm:$0xff] }
  0x11   :  { %824 = vmatprep.subr.mxu0 %v972_v7  ;;  %835 = vmatprep.subr.mxu1 %v972_v7  ;;  %v53_v8 = vsel %vm49_vm2, 1, %v971_v0  ;;  %v52_v9 = vsel %vm48_vm3, 1, %v971_v0  ;;  %v31_v14 = vand.u32 127, %v30_v11  ;;  %v85_v17 = vshrl.u32 %v30_v11, 7  ;;  %v261_v29 = vld [vmem:[#allocation2 + $0x28] sm:$0xff]  ;;  %v260_v30 = vld [vmem:[#allocation2 + $0x20] sm:$0xff] }
  0x12   :  { %832 = vmatprep.mubr.msk.f32.mxu0 %vm973_vm4, %v972_v7  ;;  %839 = vmatprep.mubr.msk.f32.mxu1 %vm973_vm4, %v972_v7  ;;  %vm101_vm1 = vcmask 261120   ;;  %vm181_vm3 = vcmask 130048   ;;  %v259_v31 = vld [vmem:[#allocation2 + $0x18] sm:$0xff]  ;;  %v258_v32 = vld [vmem:[#allocation2 + $0x10] sm:$0xff]  ;;  %v343_v41 = vld [vmem:[#allocation2 + $0x48] sm:$0xff]  ;;  %s975_s0 = smov [#allocation5]  }
  0x13   :  { %836 = vmatpush3.msra.mxu1 %v180_v10  ;;  %v90_v18 = vand.u32 3, %v31_v14  ;;  %v344_v39 = vld [vmem:[#allocation2 + $0x50] sm:$0xff]  ;;  %v347_v42 = vld [vmem:[#allocation2 + $0x68] sm:$0xff]  ;;  %v342_v43 = vld [vmem:[#allocation2 + $0x40] sm:$0xff]  ;;  %s756_s23 = sshll.u32 %s975_s0, 4  ;;  %s757_s23 = int_to_ptr.vmem [resolvable:$true] %s756_s23 }
  0x14   :  { %66 = vperm.xlu0 %916, %v55_v4   ;;  %63 = vperm.xlu1 %917, %v54_v5   ;;  %v348_v40 = vld [vmem:[#allocation2 + $0x70] sm:$0xff]  ;;  %v346_v44 = vld [vmem:[#allocation2 + $0x60] sm:$0xff]  ;;  %v341_v45 = vld [vmem:[#allocation2 + $0x38] sm:$0xff]  ;;  %s944_s24 = scalar_lea.vmem %s757_s23, 32  ;;  %p949_p6 = scmp.lt.s32.totalorder %s757_s23, %s757_s23 }
  0x15   :  { %837 = vmatprep.subr.mxu1 %v972_v7  ;;  %vm98_vm14 = vcmp.eq.s32.totalorder %v90_v18, %v85_v17  ;;  %v345_v46 = vld [vmem:[#allocation2 + $0x58] sm:$0xff]  ;;  %v776_v47 = vld [vmem:[#allocation2 + $0x30] ss:$0 sm:$0xff]  ;;  %v355_v55 = vld [vmem:[#allocation2 + $0xa8] sm:$0xff]  ;;  %p945_p5 = scmp.ne.s32.totalorder %s757_s23, %s944_s24  ;;  %p950_p7 = scmp.lt.s32.totalorder %s944_s24, %s944_s24 }
  0x16   :  { %v769_v24 = vsel %vm98_vm14, 1.0, %v972_v7  ;;  %838 = vmatpush3.msra.mxu1 %v179_v25  ;;  %v356_v51 = vld [vmem:[#allocation2 + $0xb0] sm:$0xff]  ;;  %v351_v56 = vld [vmem:[#allocation2 + $0x88] sm:$0xff]  ;;  %v354_v57 = vld [vmem:[#allocation2 + $0xa0] sm:$0xff] }
  0x17   :  { %842 = vmatprep.subr.mxu1 %v972_v7  ;;  %v352_v54 = vld [vmem:[#allocation2 + $0x90] sm:$0xff]  ;;  %v350_v59 = vld [vmem:[#allocation2 + $0x80] sm:$0xff]  ;;  %v353_v60 = vld [vmem:[#allocation2 + $0x98] sm:$0xff]  ;;  %p951_p8 = por %p950_p7, %p949_p6 }
  0x18   :  { %36 = vperm.xlu0 %916, %v27_v3   ;;  %60 = vperm.xlu1 %917, %v53_v8   ;;  %v349_v62 = vld [vmem:[#allocation2 + $0x78] sm:$0xff]  ;;  %v669_v1 = vld [vmem:[#allocation2 + $0xd0] sm:$0xff]  ;;  %v668_v2 = vld [vmem:[#allocation2 + $0xc8] sm:$0xff] }
  0x19   :  { %v670_v0 = vld [vmem:[#allocation2 + $0xd8] sm:$0xff]  ;;  %v667_v3 = vld [vmem:[#allocation2 + $0xc0] sm:$0xff]  ;;  %p952_p9 = pnand %p951_p8, %p945_p5 }
  0x1c   :  { %33 = vperm.xlu0 %916, %v26_v6   ;;  %57 = vperm.xlu1 %917, %v52_v9  }
  0x8b   :  { %v43_v12 = vpop.permute.xlu0 %42  ;;  %v40_v13 = vpop.permute.xlu1 %39 }
  0x8c   :  { %vm47_vm5 = vcmp.eq.s32.totalorder %v43_v12, %v31_v14  ;;  %vm46_vm9 = vcmp.eq.s32.totalorder %v40_v13, %v31_v14 }
  0x8f   :  { %v67_v15 = vpop.permute.xlu0 %66  ;;  %v64_v16 = vpop.permute.xlu1 %63 }
  0x90   :  { %vm71_vm6 = vcmp.eq.s32.totalorder %v67_v15, 1  ;;  %vm70_vm7 = vcmp.eq.s32.totalorder %v64_v16, 1 }
  0x91   :  { %vm75_vm8 = vmand %vm47_vm5, %vm71_vm6  ;;  %vm175_vm5 = vcmask 125952  }
  0x92   :  { %825 = vmatpush3.msk.msra.mxu0 %vm75_vm8, %v974_v19  ;;  %vm74_vm10 = vmand %vm46_vm9, %vm70_vm7 }
  0x93   :  { %826 = vmatprep.subr.mxu0 %v972_v7  ;;  %v37_v20 = vpop.permute.xlu0 %36  ;;  %v61_v21 = vpop.permute.xlu1 %60 }
  0x94   :  { %vm45_vm11 = vcmp.eq.s32.totalorder %v37_v20, %v31_v14  ;;  %vm69_vm12 = vcmp.eq.s32.totalorder %v61_v21, 1  ;;  %827 = vmatpush3.msk.msra.mxu0 %vm74_vm10, %v974_v19 }
  0x95   :  { %vm73_vm13 = vmand %vm45_vm11, %vm69_vm12  ;;  %828 = vmatprep.subr.mxu0 %v972_v7 }
  0x96   :  { %829 = vmatpush3.msk.msra.mxu0 %vm73_vm13, %v974_v19 }
  0x97   :  { %v34_v22 = vpop.permute.xlu0 %33  ;;  %v58_v23 = vpop.permute.xlu1 %57  ;;  %830 = vmatprep.subr.mxu0 %v972_v7 }
  0x98   :  { %vm44_vm15 = vcmp.eq.s32.totalorder %v34_v22, %v31_v14  ;;  %vm68_vm0 = vcmp.eq.s32.totalorder %v58_v23, 1  ;;  %v782_v14 = vld [vmem:[#allocation2 + $0xb8] ss:$0 sm:$0xff]  ;;  %v784_v22 = vld [vmem:[#allocation2 + $0xe0] ss:$0 sm:$0xff] }
  0x99   :  { %vm72_vm2 = vmand %vm44_vm15, %vm68_vm0 }
  0x9a   :  { %831 = vmatpush3.msk.msra.mxu0 %vm72_vm2, %v974_v19 }
  0x9b   :  { %833 = vmatmul.mubr.msk.f32.vlgmr.msra.gmra.mxu0 %vm101_vm1, %v769_v24  ;;  %853 = vmatprep.subr.mxu0 %v972_v7 }
  0x9c   :  { %861 = vmatprep.mubr.msk.f32.mxu0 %vm973_vm4, %v972_v7  ;;  %854 = vmatpush3.msra.mxu0 %v348_v40 }
  0x9d   :  { %855 = vmatprep.subr.mxu0 %v972_v7 }
  0x9e   :  { %856 = vmatpush3.msra.mxu0 %v347_v42 }
  0x9f   :  { %857 = vmatprep.subr.mxu0 %v972_v7 }
  0xa0   :  { %858 = vmatpush3.msra.mxu0 %v346_v44 }
  0xa1   :  { %859 = vmatprep.subr.mxu0 %v972_v7 }
  0xa2   :  { %860 = vmatpush3.msra.mxu0 %v345_v46 }
  0xa3   :  { %875 = vmatprep.subr.mxu0 %v972_v7 }
 0x15b   :  { %v171_v26 = vpop.f32.mrf.mxu0 }
 0x15c   :  { %840 = vmatmul.mubr.msk.f32.vlgmr.msra.gmra.mxu1 %vm181_vm3, %v171_v26  ;;  %v176_v27 = vsel %vm175_vm5, %v171_v26, 0.0 }
 0x15d   :  { %177 = vadd.xlane.f32.xlu0 %v176_v27  ;;  %v834_v28 = vpop.f32.mrf.mxu0  ;;  %850 = vmatprep.mubr.msk.f32.mxu1 %vm973_vm4, %v972_v7 }
 0x15e   :  { %843 = vmatpush3.msra.mxu1 %v261_v29 }
 0x15f   :  { %844 = vmatprep.subr.mxu1 %v972_v7 }
 0x160   :  { %845 = vmatpush3.msra.mxu1 %v260_v30 }
 0x161   :  { %846 = vmatprep.subr.mxu1 %v972_v7 }
 0x162   :  { %847 = vmatpush3.msra.mxu1 %v259_v31 }
 0x163   :  { %848 = vmatprep.subr.mxu1 %v972_v7 }
 0x164   :  { %849 = vmatpush3.msra.mxu1 %v258_v32 }
 0x165   :  { %864 = vmatprep.subr.mxu1 %v972_v7 }
 0x1e6   :  { %v178_v33 = vpop.xlane.xlu0 %177 }
 0x1e7   :  { %v255_v34 = vmax.f32 %v178_v33, 1.0 }
 0x1e9   :  { %918 = vrcp.f32 %v255_v34 }
 0x1f6   :  { %v919_v35 = vpop.eup %918 }
 0x21c   :  { %v251_v36 = vpop.f32.mrf.mxu1 }
 0x21d   :  { %v257_v37 = vmul.f32 %v919_v35, %v251_v36 }
 0x21e   :  { %v841_v38 = vpop.f32.mrf.mxu1 }
 0x21f   :  { %851 = vmatmul.mubr.msk.f32.vlgmr.msra.gmra.mxu1 %vm101_vm1, %v257_v37 }
 0x220   :  { %872 = vmatprep.mubr.msk.f32.mxu1 %vm973_vm4, %v972_v7  ;;  %865 = vmatpush3.msra.mxu1 %v344_v39 }
 0x221   :  { %866 = vmatprep.subr.mxu1 %v972_v7 }
 0x222   :  { %867 = vmatpush3.msra.mxu1 %v343_v41 }
 0x223   :  { %868 = vmatprep.subr.mxu1 %v972_v7 }
 0x224   :  { %869 = vmatpush3.msra.mxu1 %v342_v43 }
 0x225   :  { %870 = vmatprep.subr.mxu1 %v972_v7 }
 0x226   :  { %871 = vmatpush3.msra.mxu1 %v341_v45 }
 0x227   :  { %886 = vmatprep.subr.mxu1 %v972_v7 }
 0x2df   :  { %v336_v48 = vpop.f32.mrf.mxu1 }
 0x2e0   :  { %v337_v49 = vadd.f32 %v776_v47, %v336_v48 }
 0x2e1   :  { %v852_v50 = vpop.f32.mrf.mxu1 }
 0x2e2   :  { %920 = vtanh.f32 %v337_v49 }
 0x2ef   :  { %v921_v52 = vpop.eup %920 }
 0x2f0   :  { %873 = vmatmul.mubr.msk.f32.vlgmr.msra.gmra.mxu1 %vm101_vm1, %v921_v52  ;;  %v359_v53 = vrot.slane %v921_v52, 2 }
 0x2f1   :  { %887 = vmatpush3.msra.mxu1 %v356_v51  ;;  %894 = vmatprep.mubr.msk.f32.mxu1 %vm973_vm4, %v972_v7 }
 0x2f2   :  { %888 = vmatprep.subr.mxu1 %v972_v7  ;;  %862 = vmatmul.mubr.msk.f32.vlgmr.msra.gmra.mxu0 %vm101_vm1, %v359_v53  ;;  %v580_v58 = vsub.f32 %v921_v52, %v359_v53  ;;  %v505_v63 = vmul.f32 %v921_v52, %v359_v53 }
 0x2f3   :  { %876 = vmatpush3.msra.mxu0 %v352_v54  ;;  %889 = vmatpush3.msra.mxu1 %v355_v55 }
 0x2f4   :  { %877 = vmatprep.subr.mxu0 %v972_v7  ;;  %890 = vmatprep.subr.mxu1 %v972_v7  ;;  %v581_v61 = vand.u32 2147483647, %v580_v58 }
 0x2f5   :  { %878 = vmatpush3.msra.mxu0 %v351_v56  ;;  %891 = vmatpush3.msra.mxu1 %v354_v57 }
 0x2f6   :  { %879 = vmatprep.subr.mxu0 %v972_v7  ;;  %892 = vmatprep.subr.mxu1 %v972_v7 }
 0x2f7   :  { %880 = vmatpush3.msra.mxu0 %v350_v59  ;;  %893 = vmatpush3.msra.mxu1 %v353_v60 }
 0x2f8   :  { %881 = vmatprep.subr.mxu0 %v972_v7  ;;  %895 = vmatmul.mubr.msk.f32.vlgmr.msra.gmra.mxu1 %vm101_vm1, %v581_v61 }
 0x2f9   :  { %882 = vmatpush3.msra.mxu0 %v349_v62  ;;  %883 = vmatprep.mubr.msk.f32.mxu0 %vm973_vm4, %v972_v7 }
 0x2fa   :  { %884 = vmatmul.mubr.msk.f32.vlgmr.msra.gmra.mxu0 %vm101_vm1, %v505_v63  ;;  %897 = vmatprep.subr.mxu0 %v972_v7 }
 0x2fb   :  { %905 = vmatprep.mubr.msk.f32.mxu0 %vm973_vm4, %v972_v7  ;;  %898 = vmatpush3.msra.mxu0 %v670_v0 }
 0x2fc   :  { %899 = vmatprep.subr.mxu0 %v972_v7 }
 0x2fd   :  { %900 = vmatpush3.msra.mxu0 %v669_v1 }
 0x2fe   :  { %901 = vmatprep.subr.mxu0 %v972_v7 }
 0x2ff   :  { %902 = vmatpush3.msra.mxu0 %v668_v2 }
 0x300   :  { %903 = vmatprep.subr.mxu0 %v972_v7 }
 0x301   :  { %904 = vmatpush3.msra.mxu0 %v667_v3 }
 0x3b0   :  { %v500_v4 = vpop.f32.mrf.mxu1 }
 0x3b2   :  { %v428_v5 = vpop.f32.mrf.mxu0  ;;  %v874_v6 = vpop.f32.mrf.mxu1 }
 0x3b3   :  { %v501_v10 = vadd.f32 %v500_v4, %v428_v5 }
 0x3b4   :  { %v863_v8 = vpop.f32.mrf.mxu0 }
 0x3b8   :  { %v651_v9 = vpop.f32.mrf.mxu1 }
 0x3ba   :  { %v575_v11 = vpop.f32.mrf.mxu0  ;;  %v896_v12 = vpop.f32.mrf.mxu1 }
 0x3bb   :  { %v579_v13 = vadd.f32 %v575_v11, %v501_v10 }
 0x3bc   :  { %v885_v15 = vpop.f32.mrf.mxu0 }
 0x3bd   :  { %v655_v16 = vadd.f32 %v651_v9, %v579_v13 }
 0x3bf   :  { %v660_v17 = vadd.f32 %v782_v14, %v655_v16 }
 0x3c1   :  { %v662_v18 = vmin.f32 %v660_v17, 0.0  ;;  %vm661_vm4 = vcmp.gt.f32.partialorder %v660_v17, 0.0 }
 0x3c3   :  { %v663_v19 = vmul.f32 1.442695, %v662_v18 }
 0x3c5   :  { %922 = vpow2.f32 %v663_v19 }
 0x3d2   :  { %v923_v20 = vpop.eup %922 }
 0x3d3   :  { %v783_v21 = vadd.f32 -1.0, %v923_v20 }
 0x3d5   :  { %v666_v7 = vsel %vm661_vm4, %v660_v17, %v783_v21 }
 0x3d6   :  { %906 = vmatmul.mubr.msk.f32.vlgmr.msra.gmra.mxu0 %vm101_vm1, %v666_v7 }
 0x496   :  { %v745_v23 = vpop.f32.mrf.mxu0 }
 0x497   :  { %v746_v24 = vadd.f32 %v784_v22, %v745_v23 }
 0x498   :  { %v907_v25 = vpop.f32.mrf.mxu0 }
 0x499   :  { %749 = vst [vmem:[#allocation5] sm:$0x3] %v746_v24 }
 0x49a   :  { %955 = shalt.err (!%p952_p9)
}
 0x49b   :  { %759 = dma.vmem_to_hbm [thread:$0]  %s757_s23, 32, %s1065_s2, [#allocation4]  }
 0x49c   :  { %966 = dma.done.wait [#allocation4], 32  }
 0x49d   :  { %967 = vsyncadd [#allocation4], 4294967264 }
 0x49e   :  { %763 = vsyncpa [#allocation3], 1 }
 0x49f   :  { %764 = vsyncpa [#allocation4], 1 }

</bundles_post_ra>
